<compile_context>
chip_gen: v5e
topology: v5e:2x2
jax: 0.10.0
libtpu: 0.0.40
codegen_flags: <defaults>
</compile_context>

<pallas_src>
import jax
import jax.numpy as jnp
from jax.experimental import pallas as pl
from jax.experimental.pallas import tpu as pltpu

_EPS = 1e-5


def _round_up(n, m):
    return (n + m - 1) // m * m


def make_temporal_kernel(B, D, H):
    """Build the kernel closure with static layout offsets for the param slab."""
    H2, D2 = 2 * H, 2 * D
    r1 = _round_up(D, 8)              # start row of block-diagonal W2
    r2 = r1 + _round_up(H2, 8)        # start row of BN gamma/beta rows
    n = float(2 * B)                  # BN sample count (batch * 2 spatial rows)

    def kernel(x_ref, p_ref, out_ref):
        x = x_ref[...]                                    # (B, D)

        # --- ConvTranspose2d(D -> H, k=(2,1)) on a 1x1 input, both spatial rows at
        # once: lanes [0:H] = row h0, lanes [H:2H] = row h1.  Bias dropped (cancels
        # under train-mode BN).
        w1 = p_ref[0:D, 0:H2]                             # (D, 2H)
        y = jnp.dot(x, w1, preferred_element_type=jnp.float32)   # (B, 2H)

        # --- BatchNorm2d(H), training mode: per-channel stats over 2B samples.
        # Single pass (sum + sum-of-squares), folding the two 32-lane halves.
        y0 = y[:, 0:H]
        y1 = y[:, H:H2]
        s1 = jnp.sum(y0, axis=0, keepdims=True) + jnp.sum(y1, axis=0, keepdims=True)
        q1 = (jnp.sum(y0 * y0, axis=0, keepdims=True)
              + jnp.sum(y1 * y1, axis=0, keepdims=True))
        mean1 = s1 / n                                    # (1, H)
        var1 = jnp.maximum(q1 / n - mean1 * mean1, 0.0)
        inv1 = jax.lax.rsqrt(var1 + _EPS)
        mean1_d = jnp.concatenate([mean1, mean1], axis=1)  # (1, 2H)
        inv1_d = jnp.concatenate([inv1, inv1], axis=1)
        g1 = p_ref[r2:r2 + 1, 0:H2]                        # gamma, duplicated host-side
        be1 = p_ref[r2 + 1:r2 + 2, 0:H2]                   # beta,  duplicated host-side
        a = jnp.maximum((y - mean1_d) * inv1_d * g1 + be1, 0.0)   # (B, 2H), ReLU

        # --- ConvTranspose2d(H -> D, k=(1,1)): per-row channel projection via a
        # block-diagonal (2H, 2D) weight -> one MXU push for both spatial rows.
        w2 = p_ref[r1:r1 + H2, 0:D2]                       # (2H, 2D)
        z = jnp.dot(a, w2, preferred_element_type=jnp.float32)    # (B, 2D)

        # --- BatchNorm2d(D), training mode + ReLU, same folded single-pass stats.
        z0 = z[:, 0:D]
        z1 = z[:, D:D2]
        s2 = jnp.sum(z0, axis=0, keepdims=True) + jnp.sum(z1, axis=0, keepdims=True)
        q2 = (jnp.sum(z0 * z0, axis=0, keepdims=True)
              + jnp.sum(z1 * z1, axis=0, keepdims=True))
        mean2 = s2 / n
        var2 = jnp.maximum(q2 / n - mean2 * mean2, 0.0)
        inv2 = jax.lax.rsqrt(var2 + _EPS)
        mean2_d = jnp.concatenate([mean2, mean2], axis=1)  # (1, 2D)
        inv2_d = jnp.concatenate([inv2, inv2], axis=1)
        g2 = p_ref[r2 + 2:r2 + 3, 0:D2]
        be2 = p_ref[r2 + 3:r2 + 4, 0:D2]
        out_ref[...] = jnp.maximum((z - mean2_d) * inv2_d * g2 + be2, 0.0)  # (B, 2D)

    return kernel


def pack_params(p):
    """Pack PyTorch-shaped params into one (rows, lanes) f32 slab (off the hot path).

    Layout (rows 8-aligned per section so in-kernel slices stay tile-friendly):
      [0      : D     , 0:2H]  W1 packed:  w1p[d, h*H + o] = W1[d, o, h, 0]
      [r1     : r1+2H , 0:2D]  W2 block-diag: [[W2, 0], [0, W2]]
      [r2     : r2+1  , 0:2H]  gamma1 duplicated
      [r2+1   : r2+2  , 0:2H]  beta1  duplicated
      [r2+2   : r2+3  , 0:2D]  gamma2 duplicated
      [r2+3   : r2+4  , 0:2D]  beta2  duplicated
    Conv biases are intentionally omitted: they cancel exactly under train-mode BN.
    """
    D, H = p["w1"].shape[0], p["w1"].shape[1]
    H2, D2 = 2 * H, 2 * D
    width = max(H2, D2)
    r1 = _round_up(D, 8)
    r2 = r1 + _round_up(H2, 8)
    rows = _round_up(r2 + 4, 8)

    slab = jnp.zeros((rows, width), jnp.float32)

    # ConvTranspose2d(D, H, (2,1)).weight: (D, H, 2, 1) -> (D, 2H), spatial row major.
    w = p["w1"][..., 0]                                        # (D, H, 2)
    w1_packed = jnp.concatenate([w[:, :, 0], w[:, :, 1]], axis=1)
    slab = slab.at[0:D, 0:H2].set(w1_packed)

    # ConvTranspose2d(H, D, (1,1)).weight: (H, D, 1, 1) -> block-diagonal (2H, 2D).
    w2 = p["w2"][:, :, 0, 0]                                   # (H, D)
    slab = slab.at[r1:r1 + H, 0:D].set(w2)
    slab = slab.at[r1 + H:r1 + H2, D:D2].set(w2)

    # BN affine params, duplicated across the two spatial halves.
    slab = slab.at[r2, 0:H2].set(jnp.concatenate([p["g1"], p["g1"]]))
    slab = slab.at[r2 + 1, 0:H2].set(jnp.concatenate([p["be1"], p["be1"]]))
    slab = slab.at[r2 + 2, 0:D2].set(jnp.concatenate([p["g2"], p["g2"]]))
    slab = slab.at[r2 + 3, 0:D2].set(jnp.concatenate([p["be2"], p["be2"]]))

    return {"slab": slab, "D": D, "H": H}


def temporal_forward(x, packed):
    """x: (B, D) float32 -> (B, n_bars=2, D) float32.

    Bar h lives on axis 1 (lane-contiguous halves of the kernel's dense (B, 2D)
    slab); the reshape below is free.  Consumers wanting the PyTorch (B, D, 2)
    layout should fold the transpose into their first matmul.
    """
    B, D = x.shape
    H = packed["H"]
    vmem = pl.BlockSpec(memory_space=pltpu.MemorySpace.VMEM)
    out = pl.pallas_call(
        make_temporal_kernel(B, D, H),
        out_shape=jax.ShapeDtypeStruct((B, 2 * D), jnp.float32),
        in_specs=[vmem, vmem],
        out_specs=vmem,
    )(x, packed["slab"])
    return out.reshape(B, 2, D)


def reference_forward(x, p):
    """Pure-JAX reference mirroring the PyTorch module (train-mode BatchNorm,
    including the conv biases — validates that the kernel's bias-drop is exact)."""
    w1 = p["w1"][..., 0]                                           # (D, H, 2)
    y = jnp.einsum("bd,dor->bor", x, w1) + p["b1"][None, :, None]  # (B, H, 2)
    m1 = jnp.mean(y, axis=(0, 2), keepdims=True)
    v1 = jnp.mean((y - m1) ** 2, axis=(0, 2), keepdims=True)
    a = jnp.maximum((y - m1) / jnp.sqrt(v1 + _EPS) * p["g1"][None, :, None]
                    + p["be1"][None, :, None], 0.0)
    w2 = p["w2"][:, :, 0, 0]                                       # (H, D)
    z = jnp.einsum("bor,od->bdr", a, w2) + p["b2"][None, :, None]  # (B, D, 2)
    m2 = jnp.mean(z, axis=(0, 2), keepdims=True)
    v2 = jnp.mean((z - m2) ** 2, axis=(0, 2), keepdims=True)
    o = jnp.maximum((z - m2) / jnp.sqrt(v2 + _EPS) * p["g2"][None, :, None]
                    + p["be2"][None, :, None], 0.0)
    return o                                                       # (B, D, 2)


if __name__ == "__main__":
    # Small shapes consistent with the module: dimension=3, n_bars=2, small hid.
    B, D, H = 2, 3, 32

    key = jax.random.PRNGKey(0)
    kx, kw1, kb1, kw2, kb2 = jax.random.split(key, 5)

    x = jax.random.normal(kx, (B, D), dtype=jnp.float32)

    # Parameters in their natural PyTorch shapes.
    params = {
        # ConvTranspose2d(D, H, kernel=(2,1)).weight: (in=D, out=H, kH=2, kW=1)
        "w1": jax.random.normal(kw1, (D, H, 2, 1), dtype=jnp.float32) * 0.1,
        "b1": jax.random.normal(kb1, (H,), dtype=jnp.float32) * 0.1,
        # BatchNorm2d(H) defaults: gamma=1, beta=0
        "g1": jnp.ones((H,), dtype=jnp.float32),
        "be1": jnp.zeros((H,), dtype=jnp.float32),
        # ConvTranspose2d(H, D, kernel=(1,1)).weight: (in=H, out=D, 1, 1)
        "w2": jax.random.normal(kw2, (H, D, 1, 1), dtype=jnp.float32) * 0.1,
        "b2": jax.random.normal(kb2, (D,), dtype=jnp.float32) * 0.1,
        # BatchNorm2d(D) defaults
        "g2": jnp.ones((D,), dtype=jnp.float32),
        "be2": jnp.zeros((D,), dtype=jnp.float32),
    }

    packed = pack_params(params)                    # done once, off the hot path
    out = jax.block_until_ready(temporal_forward(x, packed))   # (B, 2, D)
    ref = reference_forward(x, params)                          # (B, D, 2)

    assert out.shape == (B, 2, D), out.shape
    # Test-only relayout to the PyTorch (B, dim, n_bars) layout for comparison.
    out_pt = jnp.transpose(out, (0, 2, 1))
    assert jnp.allclose(out_pt, ref, atol=1e-4, rtol=1e-4), \
        "mismatch vs pure-JAX reference"
    print("KERNEL_OK")
</pallas_src>

<mosaic_0001>
module attributes {stable_mosaic.version = 11 : i64} {
  func.func @kernel(%arg0: memref<2x3xf32, #tpu.memory_space<vmem>>, %arg1: memref<80x64xf32, #tpu.memory_space<vmem>>, %arg2: memref<2x6xf32, #tpu.memory_space<vmem>>) attributes {dimension_semantics = [], scalar_prefetch = 0 : i64, scratch_operands = 0 : i64, tpu.core_type = #tpu.core_type<tc>} {
    %c0 = arith.constant 0 : index
    %c0_0 = arith.constant 0 : index
    %0 = vector.load %arg0[%c0, %c0_0] : memref<2x3xf32, #tpu.memory_space<vmem>>, vector<2x3xf32>
    %c0_1 = arith.constant 0 : index
    %c0_2 = arith.constant 0 : index
    %1 = vector.load %arg1[%c0_1, %c0_2] : memref<80x64xf32, #tpu.memory_space<vmem>>, vector<3x64xf32>
    %cst = arith.constant dense<0.000000e+00> : vector<2x64xf32>
    %2 = tpu.matmul %0, %1, %cst {dimension_numbers = #tpu.dot_dimension_numbers<[1], [0], [0], [1], [0, 0, 1, 1], [], []>} : vector<2x3xf32>, vector<3x64xf32>, vector<2x64xf32> -> vector<2x64xf32>
    %3 = vector.extract_strided_slice %2 {offsets = [0, 0], sizes = [2, 32], strides = [1, 1]} : vector<2x64xf32> to vector<2x32xf32>
    %4 = vector.extract_strided_slice %2 {offsets = [0, 32], sizes = [2, 32], strides = [1, 1]} : vector<2x64xf32> to vector<2x32xf32>
    %cst_3 = arith.constant dense<0.000000e+00> : vector<32xf32>
    %5 = vector.multi_reduction <add>, %3, %cst_3 [0] : vector<2x32xf32> to vector<32xf32>
    %6 = vector.shape_cast %5 : vector<32xf32> to vector<1x32xf32>
    %cst_4 = arith.constant dense<0.000000e+00> : vector<32xf32>
    %7 = vector.multi_reduction <add>, %4, %cst_4 [0] : vector<2x32xf32> to vector<32xf32>
    %8 = vector.shape_cast %7 : vector<32xf32> to vector<1x32xf32>
    %9 = arith.addf %6, %8 : vector<1x32xf32>
    %10 = arith.mulf %3, %3 : vector<2x32xf32>
    %cst_5 = arith.constant dense<0.000000e+00> : vector<32xf32>
    %11 = vector.multi_reduction <add>, %10, %cst_5 [0] : vector<2x32xf32> to vector<32xf32>
    %12 = vector.shape_cast %11 : vector<32xf32> to vector<1x32xf32>
    %13 = arith.mulf %4, %4 : vector<2x32xf32>
    %cst_6 = arith.constant dense<0.000000e+00> : vector<32xf32>
    %14 = vector.multi_reduction <add>, %13, %cst_6 [0] : vector<2x32xf32> to vector<32xf32>
    %15 = vector.shape_cast %14 : vector<32xf32> to vector<1x32xf32>
    %16 = arith.addf %12, %15 : vector<1x32xf32>
    %cst_7 = arith.constant 4.000000e+00 : f32
    %17 = vector.broadcast %cst_7 : f32 to vector<1x32xf32>
    %18 = arith.divf %9, %17 : vector<1x32xf32>
    %cst_8 = arith.constant 4.000000e+00 : f32
    %19 = vector.broadcast %cst_8 : f32 to vector<1x32xf32>
    %20 = arith.divf %16, %19 : vector<1x32xf32>
    %21 = arith.mulf %18, %18 : vector<1x32xf32>
    %22 = arith.subf %20, %21 : vector<1x32xf32>
    %cst_9 = arith.constant 0.000000e+00 : f32
    %23 = vector.broadcast %cst_9 : f32 to vector<1x32xf32>
    %24 = arith.maximumf %22, %23 : vector<1x32xf32>
    %cst_10 = arith.constant 9.99999974E-6 : f32
    %25 = vector.broadcast %cst_10 : f32 to vector<1x32xf32>
    %26 = arith.addf %24, %25 : vector<1x32xf32>
    %27 = math.rsqrt %26 : vector<1x32xf32>
    %28 = tpu.concatenate %18, %18 in 1 : vector<1x32xf32>, vector<1x32xf32> -> vector<1x64xf32>
    %29 = tpu.concatenate %27, %27 in 1 : vector<1x32xf32>, vector<1x32xf32> -> vector<1x64xf32>
    %c72 = arith.constant 72 : index
    %c0_11 = arith.constant 0 : index
    %30 = vector.load %arg1[%c72, %c0_11] : memref<80x64xf32, #tpu.memory_space<vmem>>, vector<1x64xf32>
    %c73 = arith.constant 73 : index
    %c0_12 = arith.constant 0 : index
    %31 = vector.load %arg1[%c73, %c0_12] : memref<80x64xf32, #tpu.memory_space<vmem>>, vector<1x64xf32>
    %32 = vector.broadcast %28 : vector<1x64xf32> to vector<2x64xf32>
    %33 = arith.subf %2, %32 : vector<2x64xf32>
    %34 = vector.broadcast %29 : vector<1x64xf32> to vector<2x64xf32>
    %35 = arith.mulf %33, %34 : vector<2x64xf32>
    %36 = vector.broadcast %30 : vector<1x64xf32> to vector<2x64xf32>
    %37 = arith.mulf %35, %36 : vector<2x64xf32>
    %38 = vector.broadcast %31 : vector<1x64xf32> to vector<2x64xf32>
    %39 = arith.addf %37, %38 : vector<2x64xf32>
    %cst_13 = arith.constant 0.000000e+00 : f32
    %40 = vector.broadcast %cst_13 : f32 to vector<2x64xf32>
    %41 = arith.maximumf %39, %40 : vector<2x64xf32>
    %c8 = arith.constant 8 : index
    %c0_14 = arith.constant 0 : index
    %42 = vector.load %arg1[%c8, %c0_14] : memref<80x64xf32, #tpu.memory_space<vmem>>, vector<64x6xf32>
    %cst_15 = arith.constant dense<0.000000e+00> : vector<2x6xf32>
    %43 = tpu.matmul %41, %42, %cst_15 {dimension_numbers = #tpu.dot_dimension_numbers<[1], [0], [0], [1], [0, 0, 1, 1], [], []>} : vector<2x64xf32>, vector<64x6xf32>, vector<2x6xf32> -> vector<2x6xf32>
    %44 = vector.extract_strided_slice %43 {offsets = [0, 0], sizes = [2, 3], strides = [1, 1]} : vector<2x6xf32> to vector<2x3xf32>
    %45 = vector.extract_strided_slice %43 {offsets = [0, 3], sizes = [2, 3], strides = [1, 1]} : vector<2x6xf32> to vector<2x3xf32>
    %cst_16 = arith.constant dense<0.000000e+00> : vector<3xf32>
    %46 = vector.multi_reduction <add>, %44, %cst_16 [0] : vector<2x3xf32> to vector<3xf32>
    %47 = vector.shape_cast %46 : vector<3xf32> to vector<1x3xf32>
    %cst_17 = arith.constant dense<0.000000e+00> : vector<3xf32>
    %48 = vector.multi_reduction <add>, %45, %cst_17 [0] : vector<2x3xf32> to vector<3xf32>
    %49 = vector.shape_cast %48 : vector<3xf32> to vector<1x3xf32>
    %50 = arith.addf %47, %49 : vector<1x3xf32>
    %51 = arith.mulf %44, %44 : vector<2x3xf32>
    %cst_18 = arith.constant dense<0.000000e+00> : vector<3xf32>
    %52 = vector.multi_reduction <add>, %51, %cst_18 [0] : vector<2x3xf32> to vector<3xf32>
    %53 = vector.shape_cast %52 : vector<3xf32> to vector<1x3xf32>
    %54 = arith.mulf %45, %45 : vector<2x3xf32>
    %cst_19 = arith.constant dense<0.000000e+00> : vector<3xf32>
    %55 = vector.multi_reduction <add>, %54, %cst_19 [0] : vector<2x3xf32> to vector<3xf32>
    %56 = vector.shape_cast %55 : vector<3xf32> to vector<1x3xf32>
    %57 = arith.addf %53, %56 : vector<1x3xf32>
    %cst_20 = arith.constant 4.000000e+00 : f32
    %58 = vector.broadcast %cst_20 : f32 to vector<1x3xf32>
    %59 = arith.divf %50, %58 : vector<1x3xf32>
    %cst_21 = arith.constant 4.000000e+00 : f32
    %60 = vector.broadcast %cst_21 : f32 to vector<1x3xf32>
    %61 = arith.divf %57, %60 : vector<1x3xf32>
    %62 = arith.mulf %59, %59 : vector<1x3xf32>
    %63 = arith.subf %61, %62 : vector<1x3xf32>
    %cst_22 = arith.constant 0.000000e+00 : f32
    %64 = vector.broadcast %cst_22 : f32 to vector<1x3xf32>
    %65 = arith.maximumf %63, %64 : vector<1x3xf32>
    %cst_23 = arith.constant 9.99999974E-6 : f32
    %66 = vector.broadcast %cst_23 : f32 to vector<1x3xf32>
    %67 = arith.addf %65, %66 : vector<1x3xf32>
    %68 = math.rsqrt %67 : vector<1x3xf32>
    %69 = tpu.concatenate %59, %59 in 1 : vector<1x3xf32>, vector<1x3xf32> -> vector<1x6xf32>
    %70 = tpu.concatenate %68, %68 in 1 : vector<1x3xf32>, vector<1x3xf32> -> vector<1x6xf32>
    %c74 = arith.constant 74 : index
    %c0_24 = arith.constant 0 : index
    %71 = vector.load %arg1[%c74, %c0_24] : memref<80x64xf32, #tpu.memory_space<vmem>>, vector<1x6xf32>
    %c75 = arith.constant 75 : index
    %c0_25 = arith.constant 0 : index
    %72 = vector.load %arg1[%c75, %c0_25] : memref<80x64xf32, #tpu.memory_space<vmem>>, vector<1x6xf32>
    %73 = vector.broadcast %69 : vector<1x6xf32> to vector<2x6xf32>
    %74 = arith.subf %43, %73 : vector<2x6xf32>
    %75 = vector.broadcast %70 : vector<1x6xf32> to vector<2x6xf32>
    %76 = arith.mulf %74, %75 : vector<2x6xf32>
    %77 = vector.broadcast %71 : vector<1x6xf32> to vector<2x6xf32>
    %78 = arith.mulf %76, %77 : vector<2x6xf32>
    %79 = vector.broadcast %72 : vector<1x6xf32> to vector<2x6xf32>
    %80 = arith.addf %78, %79 : vector<2x6xf32>
    %cst_26 = arith.constant 0.000000e+00 : f32
    %81 = vector.broadcast %cst_26 : f32 to vector<2x6xf32>
    %82 = arith.maximumf %80, %81 : vector<2x6xf32>
    %c0_27 = arith.constant 0 : index
    %c0_28 = arith.constant 0 : index
    %83 = vector.load %arg2[%c0_27, %c0_28] : memref<2x6xf32, #tpu.memory_space<vmem>>, vector<2x6xf32>
    tpu.vector_store %arg2[%c0_27, %c0_28], %82 {strides = array<i32>} : memref<2x6xf32, #tpu.memory_space<vmem>>, vector<2x6xf32>,
    return
  }
}

</mosaic_0001>

<bundles_post_ra>
// kernel: tpu_custom_call.1
= control target key start
LH: loop header
LB: loop body
LE: loop exit
PB: predicated region body
PF: predicated region fallthrough
CT: control target
= control target key end

     0   :  { %vm18_vm0 = vcmask 1042432   ;;  %vm14_vm1 = vcmask 23552   ;;  %s390_s0 = inlined_call_operand.vmem [shape: f32[2,3], index: 0, kind: input, shape index: {}]   ;;  %s391_s1 = inlined_call_operand.vmem [shape: f32[80,64], index: 1, kind: input, shape index: {}]   ;;  %s392_s2 = inlined_call_operand.hbm [shape: f32[2,6], index: 2, kind: output, shape index: {}]  }
   0x1   :  { %v13_v0 = vld [vmem:[%s391_s1] sm:$0x7] }
   0x2   :  { %v12_v1 = vld [vmem:[%s390_s0] sm:$0x3]  ;;  %256 = vmatpush.msk.msra.mxu0 %vm18_vm0, %v13_v0 }
   0x3   :  { %257 = vmatmul.msk.f32.vlgmr.msra.gmra.mxu0 %vm14_vm1, %v12_v1 }
   0x4   :  { %7 = vsyncpa [#allocation3], 0  ;;  %vm50_vm2 = vcmask 517376   ;;  %s301_s0 = smov 96   ;;  %vm42_vm3 = vcmask 254976   ;;  %v302_v18 = vmov 4.0  }
   0x5   :  { %269 = vrcp.f32 %v302_v18  ;;  %s303_s13 = smov 32   ;;  %v135_v56 = vld [vmem:[%s391_s1 + $0x40] sm:$0xff]  ;;  %v134_v57 = vld [vmem:[%s391_s1 + $0x38] sm:$0xff]  ;;  %v133_v58 = vld [vmem:[%s391_s1 + $0x30] sm:$0xff]  ;;  %vm110_vm8 = vcmask 261120   ;;  %vm136_vm9 = vcmask 523264  }
   0x6   :  { %148 = vmatpush.msra.mxu1 %v135_v56  ;;  %v132_v59 = vld [vmem:[%s391_s1 + $0x28] sm:$0xff]  ;;  %v131_v60 = vld [vmem:[%s391_s1 + $0x20] sm:$0xff]  ;;  %v130_v61 = vld [vmem:[%s391_s1 + $0x18] sm:$0xff]  ;;  %vm168_vm10 = vcmask 42008   ;;  %s304_s6 = smov 125   ;;  %vm160_vm11 = vcmask 17408  }
   0x7   :  { %v129_v62 = vld [vmem:[%s391_s1 + $0x10] sm:$0xff]  ;;  %v128_v63 = vld [vmem:[%s391_s1 + $0x8] sm:$0xff]  ;;  %s305_s7 = smov 3   ;;  %s306_s12 = smov [#allocation2]   ;;  %vm238_vm15 = vcmask 41984  }
   0x8   :  { %149 = vmatpush.msra.mxu1 %v134_v57  ;;  %s247_s15 = sshll.u32 %s392_s2, 4  ;;  %s248_s15 = int_to_ptr.hbm [resolvable:$true] %s247_s15 }
   0xa   :  { %150 = vmatpush.msra.mxu1 %v133_v58 }
   0xb   :  { %v270_v21 = vpop.eup %269 }
   0xc   :  { %v84_v24 = vmul.f32 4.0, %v270_v21  ;;  %vm88_vm4 = vweird.f32 %v270_v21  ;;  %151 = vmatpush.msra.mxu1 %v132_v59 }
   0xe   :  { %v85_v27 = vsub.f32 1.0, %v84_v24  ;;  %152 = vmatpush.msra.mxu1 %v131_v60 }
  0x10   :  { %v86_v30 = vmul.f32 %v270_v21, %v85_v27  ;;  %153 = vmatpush.msra.mxu1 %v130_v61 }
  0x12   :  { %v87_v33 = vadd.f32 %v270_v21, %v86_v30  ;;  %154 = vmatpush.msra.mxu1 %v129_v62 }
  0x14   :  { %v335_v36 = vsel %vm88_vm4, %v270_v21, %v87_v33  ;;  %155 = vmatpush.msra.mxu1 %v128_v63 }
  0x80   :  { %v329_v2 = vpop.f32.mrf.mxu0 }
  0x81   :  { %v51_v3 = vsel %vm50_vm2, %v329_v2, 0.0  ;;  %v63_v4 = vmul.f32 %v329_v2, %v329_v2  ;;  %v43_v19 = vsel %vm42_vm3, %v329_v2, 0.0 }
  0x82   :  { %v52_v5 = vrot.slane %v51_v3, 4  ;;  %v44_v20 = vrot.slane %v43_v19, 4 }
  0x83   :  { %v71_v6 = vsel %vm50_vm2, %v63_v4, 0.0  ;;  %v64_v23 = vsel %vm42_vm3, %v63_v4, 0.0 }
  0x84   :  { %v53_v7 = vadd.f32 %v52_v5, %v51_v3  ;;  %v72_v8 = vrot.slane %v71_v6, 4  ;;  %v45_v22 = vadd.f32 %v44_v20, %v43_v19  ;;  %v65_v25 = vrot.slane %v64_v23, 4 }
  0x86   :  { %v73_v9 = vadd.f32 %v72_v8, %v71_v6  ;;  %v54_v10 = vrot.slane %v53_v7, 2  ;;  %v46_v26 = vrot.slane %v45_v22, 2  ;;  %v66_v29 = vadd.f32 %v65_v25, %v64_v23 }
  0x88   :  { %v55_v11 = vadd.f32 %v54_v10, %v53_v7  ;;  %v74_v12 = vrot.slane %v73_v9, 2  ;;  %v47_v28 = vadd.f32 %v46_v26, %v45_v22  ;;  %v67_v32 = vrot.slane %v66_v29, 2  ;;  %v265_v7 = vld [vmem:[%s391_s1 + $0x48] ss:$0 sm:$0xff]  ;;  %v266_v10 = vld [vmem:[%s391_s1 + $0x49] ss:$0 sm:$0xff] }
  0x8a   :  { %v56_v13 = vrot.slane %v55_v11, 1  ;;  %v75_v15 = vadd.f32 %v74_v12, %v73_v9  ;;  %v48_v31 = vrot.slane %v47_v28, 1  ;;  %v68_v35 = vadd.f32 %v67_v32, %v66_v29 }
  0x8c   :  { %v57_v14 = vadd.f32 %v56_v13, %v55_v11  ;;  %v76_v16 = vrot.slane %v75_v15, 1  ;;  %v49_v34 = vadd.f32 %v48_v31, %v47_v28  ;;  %v69_v40 = vrot.slane %v68_v35, 1 }
  0x8e   :  { %59 = vrot.lane.b32.xlu0 %v57_v14, %s301_s0  ;;  %v77_v17 = vadd.f32 %v76_v16, %v75_v15  ;;  %v70_v41 = vadd.f32 %v69_v40, %v68_v35 }
  0x96   :  { %79 = vrot.lane.b32.xlu0 %v77_v17, %s301_s0  ;;  %s245_s0 = sshll.u32 %s306_s12, 4  ;;  %s246_s0 = int_to_ptr.vmem [resolvable:$true] %s245_s0 }
 0x100   :  { %v60_v37 = vpop.permute.xlu0 %59 }
 0x101   :  { %v62_v38 = vadd.f32 %v60_v37, %v49_v34 }
 0x103   :  { %v90_v39 = vmul.f32 %v335_v36, %v62_v38 }
 0x105   :  { %107 = vrot.lane.b32.xlu1 %v90_v39, %s303_s13  ;;  %v92_v45 = vmul.f32 %v90_v39, %v90_v39 }
 0x108   :  { %v80_v42 = vpop.permute.xlu0 %79 }
 0x109   :  { %v82_v43 = vadd.f32 %v80_v42, %v70_v41 }
 0x10b   :  { %v91_v44 = vmul.f32 %v335_v36, %v82_v43 }
 0x10d   :  { %v93_v46 = vsub.f32 %v91_v44, %v92_v45 }
 0x10f   :  { %v94_v47 = vmax.f32 %v93_v46, 0.0 }
 0x111   :  { %v95_v48 = vadd.f32 1e-05, %v94_v47 }
 0x113   :  { %271 = vrsqrt.f32 %v95_v48  ;;  %vm102_vm6 = vweird.f32 %v95_v48 }
 0x119   :  { %v272_v49 = vpop.eup %271 }
 0x11a   :  { %v97_v50 = vmul.f32 %v272_v49, %v95_v48  ;;  %vm103_vm5 = vweird.f32 %v272_v49 }
 0x11b   :  { %vm104_vm7 = vmor %vm102_vm6, %vm103_vm5 }
 0x11c   :  { %v98_v51 = vmul.f32 %v272_v49, %v97_v50 }
 0x11e   :  { %v99_v52 = vmul.f32 0.5, %v98_v51 }
 0x120   :  { %v100_v53 = vsub.f32 1.5, %v99_v52 }
 0x122   :  { %v101_v54 = vmul.f32 %v272_v49, %v100_v53 }
 0x124   :  { %v105_v55 = vsel %vm104_vm7, %v272_v49, %v101_v54 }
 0x125   :  { %113 = vrot.lane.b32.xlu1 %v105_v55, %s303_s13 }
 0x177   :  { %v108_v0 = vpop.permute.xlu1 %107 }
 0x178   :  { %v111_v1 = vsel %vm110_vm8, %v90_v39, %v108_v0 }
 0x179   :  { %v119_v3 = vperm.slane %v111_v1, 0 }
 0x17b   :  { %v120_v6 = vsub.f32 %v329_v2, %v119_v3  ;;  %v267_v3 = vld [vmem:[%s391_s1 + $0x4a] ss:$0 sm:$0xff] }
 0x197   :  { %v114_v4 = vpop.permute.xlu1 %113 }
 0x198   :  { %v116_v5 = vsel %vm110_vm8, %v105_v55, %v114_v4 }
 0x199   :  { %v121_v8 = vperm.slane %v116_v5, 0 }
 0x19b   :  { %v122_v9 = vmul.f32 %v121_v8, %v120_v6  ;;  %v268_v6 = vld [vmem:[%s391_s1 + $0x4b] ss:$0 sm:$0xff] }
 0x19d   :  { %v124_v11 = vmul.f32 %v265_v7, %v122_v9 }
 0x19f   :  { %v126_v12 = vadd.f32 %v266_v10, %v124_v11 }
 0x1a1   :  { %v127_v13 = vmax.f32 %v126_v12, 0.0 }
 0x1a3   :  { %258 = vmatmul.msk.f32.vlgmr.msra.gmra.mxu1 %vm136_vm9, %v127_v13 }
 0x220   :  { %v370_v14 = vpop.f32.mrf.mxu1 }
 0x221   :  { %v169_v2 = vsel %vm168_vm10, %v370_v14, 0.0  ;;  %v181_v15 = vmul.f32 %v370_v14, %v370_v14  ;;  %v161_v29 = vsel %vm160_vm11, %v370_v14, 0.0 }
 0x222   :  { %v170_v16 = vrot.slane %v169_v2, 4  ;;  %v162_v30 = vrot.slane %v161_v29, 4 }
 0x223   :  { %v189_v17 = vsel %vm168_vm10, %v181_v15, 0.0  ;;  %v182_v32 = vsel %vm160_vm11, %v181_v15, 0.0 }
 0x224   :  { %v171_v18 = vadd.f32 %v170_v16, %v169_v2  ;;  %v190_v19 = vrot.slane %v189_v17, 4  ;;  %v163_v31 = vadd.f32 %v162_v30, %v161_v29  ;;  %v183_v33 = vrot.slane %v182_v32, 4 }
 0x226   :  { %v191_v20 = vadd.f32 %v190_v19, %v189_v17  ;;  %v172_v21 = vrot.slane %v171_v18, 2  ;;  %v164_v34 = vrot.slane %v163_v31, 2  ;;  %v184_v37 = vadd.f32 %v183_v33, %v182_v32 }
 0x228   :  { %v173_v22 = vadd.f32 %v172_v21, %v171_v18  ;;  %v192_v23 = vrot.slane %v191_v20, 2  ;;  %v165_v35 = vadd.f32 %v164_v34, %v163_v31  ;;  %v185_v39 = vrot.slane %v184_v37, 2 }
 0x22a   :  { %v174_v24 = vrot.slane %v173_v22, 1  ;;  %v193_v26 = vadd.f32 %v192_v23, %v191_v20  ;;  %v166_v38 = vrot.slane %v165_v35, 1  ;;  %v186_v41 = vadd.f32 %v185_v39, %v184_v37 }
 0x22c   :  { %v175_v25 = vadd.f32 %v174_v24, %v173_v22  ;;  %v194_v27 = vrot.slane %v193_v26, 1  ;;  %v167_v40 = vadd.f32 %v166_v38, %v165_v35  ;;  %v187_v45 = vrot.slane %v186_v41, 1 }
 0x22e   :  { %177 = vrot.lane.b32.xlu2 %v175_v25, %s304_s6  ;;  %v195_v28 = vadd.f32 %v194_v27, %v193_v26  ;;  %v188_v46 = vadd.f32 %v187_v45, %v186_v41 }
 0x236   :  { %197 = vrot.lane.b32.xlu2 %v195_v28, %s304_s6 }
 0x288   :  { %v178_v42 = vpop.permute.xlu2 %177 }
 0x289   :  { %v180_v43 = vadd.f32 %v178_v42, %v167_v40 }
 0x28b   :  { %v201_v44 = vmul.f32 %v180_v43, %v335_v36 }
 0x28d   :  { %218 = vrot.lane.b32.xlu0 %v201_v44, %s305_s7  ;;  %v203_v50 = vmul.f32 %v201_v44, %v201_v44 }
 0x290   :  { %v198_v47 = vpop.permute.xlu2 %197 }
 0x291   :  { %v200_v48 = vadd.f32 %v198_v47, %v188_v46 }
 0x293   :  { %v202_v49 = vmul.f32 %v200_v48, %v335_v36 }
 0x295   :  { %v204_v51 = vsub.f32 %v202_v49, %v203_v50 }
 0x297   :  { %v205_v52 = vmax.f32 %v204_v51, 0.0 }
 0x299   :  { %v206_v53 = vadd.f32 1e-05, %v205_v52 }
 0x29b   :  { %273 = vrsqrt.f32 %v206_v53  ;;  %vm213_vm13 = vweird.f32 %v206_v53 }
 0x2a1   :  { %v274_v54 = vpop.eup %273 }
 0x2a2   :  { %v208_v55 = vmul.f32 %v274_v54, %v206_v53  ;;  %vm214_vm12 = vweird.f32 %v274_v54 }
 0x2a3   :  { %vm215_vm14 = vmor %vm213_vm13, %vm214_vm12 }
 0x2a4   :  { %v209_v56 = vmul.f32 %v274_v54, %v208_v55 }
 0x2a6   :  { %v210_v57 = vmul.f32 0.5, %v209_v56 }
 0x2a8   :  { %v211_v58 = vsub.f32 1.5, %v210_v57 }
 0x2aa   :  { %v212_v59 = vmul.f32 %v274_v54, %v211_v58 }
 0x2ac   :  { %v216_v60 = vsel %vm215_vm14, %v274_v54, %v212_v59 }
 0x2ad   :  { %223 = vrot.lane.b32.xlu1 %v216_v60, %s305_s7 }
 0x2ff   :  { %v219_v61 = vpop.permute.xlu0 %218 }
 0x300   :  { %v221_v62 = vsel %vm14_vm1, %v201_v44, %v219_v61 }
 0x301   :  { %v229_v36 = vperm.slane %v221_v62, 0 }
 0x303   :  { %v230_v1 = vsub.f32 %v370_v14, %v229_v36 }
 0x31f   :  { %v224_v63 = vpop.permute.xlu1 %223 }
 0x320   :  { %v226_v0 = vsel %vm14_vm1, %v216_v60, %v224_v63 }
 0x321   :  { %v231_v4 = vperm.slane %v226_v0, 0 }
 0x323   :  { %v232_v5 = vmul.f32 %v231_v4, %v230_v1 }
 0x325   :  { %v234_v7 = vmul.f32 %v267_v3, %v232_v5 }
 0x327   :  { %v236_v8 = vadd.f32 %v268_v6, %v234_v7 }
 0x329   :  { %v237_v9 = vmax.f32 %v236_v8, 0.0 }
 0x32b   :  { %239 = vst.msk [vmem:[#allocation2] sm:$0x3] %vm238_vm15, %v237_v9 }
 0x32c   :  { %250 = dma.vmem_to_hbm [thread:$0]  %s246_s0, 32, %s248_s15, [#allocation3]  }
 0x32d   :  { %299 = dma.done.wait [#allocation3], 32  }
 0x32e   :  { %300 = vsyncadd [#allocation3], 4294967264 }
 0x32f   :  { %255 = vsyncpa [#allocation3], 1 }

</bundles_post_ra>
